<compile_context>
chip_gen: v5e
topology: v5e:2x2
jax: 0.10.0
libtpu: 0.0.40
codegen_flags: <defaults>
</compile_context>

<pallas_src>
import functools
import math

import jax
import jax.numpy as jnp
import numpy as np
from jax.experimental import pallas as pl
from jax.experimental.pallas import tpu as pltpu

_LANES = 128                       # lane-dense last dim (full vreg width)
_INV_SQRT_2PI = 1.0 / math.sqrt(2.0 * math.pi)
_INV_SQRT_2 = 1.0 / math.sqrt(2.0)


def _erf_f32(x):
    """float32-accurate erf from guaranteed-lowerable ops (exp/mul/add/where).

    Abramowitz & Stegun 7.1.26 rational approximation, |abs err| <= 1.5e-7,
    i.e. at float32 precision.  Avoids relying on a lax.erf lowering rule in
    Mosaic; exp goes to the EUP slot, the polynomial is cheap VPU filler.
    """
    a1, a2, a3, a4, a5 = (0.254829592, -0.284496736, 1.421413741,
                          -1.453152027, 1.061405429)
    p = 0.3275911
    sign = jnp.where(x >= 0.0, 1.0, -1.0)
    ax = jnp.abs(x)
    t = 1.0 / (1.0 + p * ax)
    poly = ((((a5 * t + a4) * t + a3) * t + a2) * t + a1) * t
    return sign * (1.0 - poly * jnp.exp(-ax * ax))


def _adf_leaky_relu_kernel(negative_slope, mean_ref, var_ref,
                           out_mean_ref, out_var_ref):
    mean = mean_ref[...]
    var = var_ref[...]

    stddev = jnp.sqrt(var)
    div = mean / stddev
    pdf = _INV_SQRT_2PI * jnp.exp(-0.5 * div * div)
    cdf = 0.5 * (1.0 + _erf_f32(div * _INV_SQRT_2))
    negative_cdf = 1.0 - cdf

    mu_cdf = mean * cdf
    stddev_pdf = stddev * pdf
    squared_mean_variance = mean * mean + var
    mean_stddev_pdf = mean * stddev_pdf

    mean_r = mu_cdf + stddev_pdf
    variance_r = squared_mean_variance * cdf + mean_stddev_pdf - mean_r * mean_r
    mean_n = -mean * negative_cdf + stddev_pdf
    variance_n = (squared_mean_variance * negative_cdf - mean_stddev_pdf
                  - mean_n * mean_n)
    covxy = -mean_r * mean_n

    s = negative_slope
    out_mean_ref[...] = mean_r - s * mean_n
    out_var_ref[...] = variance_r + (s * s) * variance_n - 2.0 * s * covxy
    # TODO(synk): keep_variance_fn is None in this instantiation; if supplied
    # it would be applied to out_var here.


def adf_leaky_relu(features_mean, features_variance, negative_slope=0.01,
                   max_block_rows=1024):
    """ADF LeakyReLU forward. Works for any input shape (elementwise).

    Flattens to a lane-dense (rows, 128) f32 layout, pads rows to a multiple
    of the (8,128)-aligned block, and runs a 1-D "parallel" grid over row
    blocks so the auto-pipeline double-buffers HBM<->VMEM and megacore chips
    (v7x) shard the work across both TensorCores.
    """
    assert features_mean.shape == features_variance.shape
    orig_shape = features_mean.shape
    n = int(np.prod(orig_shape))

    rows = pl.cdiv(n, _LANES)
    block_rows = max(8, min(max_block_rows, ((rows + 7) // 8) * 8))
    padded_rows = pl.cdiv(rows, block_rows) * block_rows
    total = padded_rows * _LANES

    def to_tiles(x):
        flat = x.reshape(-1).astype(jnp.float32)
        # Pad with 1.0 (valid variance / benign mean) so no NaNs in padding.
        flat = jnp.pad(flat, (0, total - n), constant_values=1.0)
        return flat.reshape(padded_rows, _LANES)

    mean2d = to_tiles(features_mean)
    var2d = to_tiles(features_variance)

    grid = (padded_rows // block_rows,)
    spec = pl.BlockSpec((block_rows, _LANES), lambda i: (i, 0))

    cost = pl.CostEstimate(
        flops=30 * total,              # ~30 VPU ops per element
        transcendentals=3 * total,     # sqrt, exp(pdf), exp(erf)
        bytes_accessed=4 * total * 4,  # 2 in + 2 out, f32
    )

    out_mean2d, out_var2d = pl.pallas_call(
        functools.partial(_adf_leaky_relu_kernel, float(negative_slope)),
        out_shape=(jax.ShapeDtypeStruct((padded_rows, _LANES), jnp.float32),
                   jax.ShapeDtypeStruct((padded_rows, _LANES), jnp.float32)),
        grid=grid,
        in_specs=[spec, spec],
        out_specs=(spec, spec),
        compiler_params=pltpu.CompilerParams(
            dimension_semantics=("parallel",)),
        cost_estimate=cost,
    )(mean2d, var2d)

    out_mean = out_mean2d.reshape(-1)[:n].reshape(orig_shape)
    out_var = out_var2d.reshape(-1)[:n].reshape(orig_shape)
    return out_mean, out_var


def adf_leaky_relu_ref(features_mean, features_variance, negative_slope=0.01):
    """Pure-JAX reference, literal translation of the PyTorch module."""
    erf = jax.scipy.special.erf
    stddev = jnp.sqrt(features_variance)
    div = features_mean / stddev
    pdf = jnp.exp(-0.5 * div * div) / np.sqrt(2.0 * np.pi)
    cdf = 0.5 * (1.0 + erf(div / np.sqrt(2.0)))
    negative_cdf = 1.0 - cdf
    mu_cdf = features_mean * cdf
    stddev_pdf = stddev * pdf
    squared_mean_variance = features_mean ** 2 + features_variance
    mean_stddev_pdf = features_mean * stddev_pdf
    mean_r = mu_cdf + stddev_pdf
    variance_r = squared_mean_variance * cdf + mean_stddev_pdf - mean_r ** 2
    mean_n = -features_mean * negative_cdf + stddev_pdf
    variance_n = (squared_mean_variance * negative_cdf - mean_stddev_pdf
                  - mean_n ** 2)
    covxy = -mean_r * mean_n
    outputs_mean = mean_r - negative_slope * mean_n
    outputs_variance = (variance_r + negative_slope ** 2 * variance_n
                        - 2.0 * negative_slope * covxy)
    return outputs_mean, outputs_variance


if __name__ == "__main__":
    key = jax.random.PRNGKey(0)
    k1, k2 = jax.random.split(key, 2)

    # Small shapes consistent with a conv-net feature map: (B, C, H, W).
    shape = (2, 4, 16, 16)
    features_mean = jax.random.normal(k1, shape, dtype=jnp.float32)
    # Variances must be strictly positive.
    features_variance = jax.random.uniform(
        k2, shape, minval=0.05, maxval=1.0, dtype=jnp.float32)

    out_mean, out_var = adf_leaky_relu(features_mean, features_variance,
                                       negative_slope=0.01)
    jax.block_until_ready((out_mean, out_var))

    ref_mean, ref_var = adf_leaky_relu_ref(features_mean, features_variance,
                                           negative_slope=0.01)

    assert out_mean.shape == shape and out_var.shape == shape
    assert jnp.allclose(out_mean, ref_mean, atol=1e-4, rtol=1e-4), (
        float(jnp.max(jnp.abs(out_mean - ref_mean))))
    assert jnp.allclose(out_var, ref_var, atol=1e-4, rtol=1e-4), (
        float(jnp.max(jnp.abs(out_var - ref_var))))

    print("KERNEL_OK")
</pallas_src>

<mosaic_0001>
module attributes {stable_mosaic.version = 11 : i64} {
  func.func @_adf_leaky_relu_kernel(%arg0: i32, %arg1: memref<16x128xf32, #tpu.memory_space<vmem>>, %arg2: memref<16x128xf32, #tpu.memory_space<vmem>>, %arg3: memref<16x128xf32, #tpu.memory_space<vmem>>, %arg4: memref<16x128xf32, #tpu.memory_space<vmem>>) attributes {dimension_semantics = [#tpu.dimension_semantics<parallel>], iteration_bounds = array<i64: 1>, scalar_prefetch = 0 : i64, scratch_operands = 0 : i64, tpu.core_type = #tpu.core_type<tc>, window_params = [{transform_indices = @transform_0, window_bounds = array<i64: 16, 128>}, {transform_indices = @transform_1, window_bounds = array<i64: 16, 128>}, {transform_indices = @transform_2, window_bounds = array<i64: 16, 128>}, {transform_indices = @transform_3, window_bounds = array<i64: 16, 128>}]} {
    %c0 = arith.constant 0 : index
    %c0_0 = arith.constant 0 : index
    %0 = vector.load %arg1[%c0, %c0_0] : memref<16x128xf32, #tpu.memory_space<vmem>>, vector<16x128xf32>
    %c0_1 = arith.constant 0 : index
    %c0_2 = arith.constant 0 : index
    %1 = vector.load %arg2[%c0_1, %c0_2] : memref<16x128xf32, #tpu.memory_space<vmem>>, vector<16x128xf32>
    %2 = math.sqrt %1 : vector<16x128xf32>
    %3 = arith.divf %0, %2 : vector<16x128xf32>
    %cst = arith.constant -5.000000e-01 : f32
    %4 = vector.broadcast %cst : f32 to vector<16x128xf32>
    %5 = arith.mulf %4, %3 : vector<16x128xf32>
    %6 = arith.mulf %5, %3 : vector<16x128xf32>
    %7 = math.exp %6 : vector<16x128xf32>
    %cst_3 = arith.constant 0.398942292 : f32
    %8 = vector.broadcast %cst_3 : f32 to vector<16x128xf32>
    %9 = arith.mulf %8, %7 : vector<16x128xf32>
    %cst_4 = arith.constant 0.707106769 : f32
    %10 = vector.broadcast %cst_4 : f32 to vector<16x128xf32>
    %11 = arith.mulf %3, %10 : vector<16x128xf32>
    %cst_5 = arith.constant 0.000000e+00 : f32
    %12 = vector.broadcast %cst_5 : f32 to vector<16x128xf32>
    %13 = arith.cmpf oge, %11, %12 : vector<16x128xf32>
    %cst_6 = arith.constant 1.000000e+00 : f32
    %cst_7 = arith.constant -1.000000e+00 : f32
    %14 = vector.broadcast %cst_6 : f32 to vector<16x128xf32>
    %15 = vector.broadcast %cst_7 : f32 to vector<16x128xf32>
    %16 = arith.select %13, %14, %15 : vector<16x128xi1>, vector<16x128xf32>
    %17 = math.absf %11 : vector<16x128xf32>
    %cst_8 = arith.constant 0.327591091 : f32
    %18 = vector.broadcast %cst_8 : f32 to vector<16x128xf32>
    %19 = arith.mulf %18, %17 : vector<16x128xf32>
    %cst_9 = arith.constant 1.000000e+00 : f32
    %20 = vector.broadcast %cst_9 : f32 to vector<16x128xf32>
    %21 = arith.addf %20, %19 : vector<16x128xf32>
    %cst_10 = arith.constant 1.000000e+00 : f32
    %22 = vector.broadcast %cst_10 : f32 to vector<16x128xf32>
    %23 = arith.divf %22, %21 : vector<16x128xf32>
    %cst_11 = arith.constant 1.06140542 : f32
    %24 = vector.broadcast %cst_11 : f32 to vector<16x128xf32>
    %25 = arith.mulf %24, %23 : vector<16x128xf32>
    %cst_12 = arith.constant -1.45315206 : f32
    %26 = vector.broadcast %cst_12 : f32 to vector<16x128xf32>
    %27 = arith.addf %25, %26 : vector<16x128xf32>
    %28 = arith.mulf %27, %23 : vector<16x128xf32>
    %cst_13 = arith.constant 1.42141378 : f32
    %29 = vector.broadcast %cst_13 : f32 to vector<16x128xf32>
    %30 = arith.addf %28, %29 : vector<16x128xf32>
    %31 = arith.mulf %30, %23 : vector<16x128xf32>
    %cst_14 = arith.constant -0.284496725 : f32
    %32 = vector.broadcast %cst_14 : f32 to vector<16x128xf32>
    %33 = arith.addf %31, %32 : vector<16x128xf32>
    %34 = arith.mulf %33, %23 : vector<16x128xf32>
    %cst_15 = arith.constant 0.254829586 : f32
    %35 = vector.broadcast %cst_15 : f32 to vector<16x128xf32>
    %36 = arith.addf %34, %35 : vector<16x128xf32>
    %37 = arith.mulf %36, %23 : vector<16x128xf32>
    %cst_16 = arith.constant 0.000000e+00 : f32
    %38 = vector.broadcast %cst_16 : f32 to vector<16x128xf32>
    %39 = arith.subf %38, %17 : vector<16x128xf32>
    %40 = arith.mulf %39, %17 : vector<16x128xf32>
    %41 = math.exp %40 : vector<16x128xf32>
    %42 = arith.mulf %37, %41 : vector<16x128xf32>
    %cst_17 = arith.constant 1.000000e+00 : f32
    %43 = vector.broadcast %cst_17 : f32 to vector<16x128xf32>
    %44 = arith.subf %43, %42 : vector<16x128xf32>
    %45 = arith.mulf %16, %44 : vector<16x128xf32>
    %cst_18 = arith.constant 1.000000e+00 : f32
    %46 = vector.broadcast %cst_18 : f32 to vector<16x128xf32>
    %47 = arith.addf %46, %45 : vector<16x128xf32>
    %cst_19 = arith.constant 5.000000e-01 : f32
    %48 = vector.broadcast %cst_19 : f32 to vector<16x128xf32>
    %49 = arith.mulf %48, %47 : vector<16x128xf32>
    %cst_20 = arith.constant 1.000000e+00 : f32
    %50 = vector.broadcast %cst_20 : f32 to vector<16x128xf32>
    %51 = arith.subf %50, %49 : vector<16x128xf32>
    %52 = arith.mulf %0, %49 : vector<16x128xf32>
    %53 = arith.mulf %2, %9 : vector<16x128xf32>
    %54 = arith.mulf %0, %0 : vector<16x128xf32>
    %55 = arith.addf %54, %1 : vector<16x128xf32>
    %56 = arith.mulf %0, %53 : vector<16x128xf32>
    %57 = arith.addf %52, %53 : vector<16x128xf32>
    %58 = arith.mulf %55, %49 : vector<16x128xf32>
    %59 = arith.addf %58, %56 : vector<16x128xf32>
    %60 = arith.mulf %57, %57 : vector<16x128xf32>
    %61 = arith.subf %59, %60 : vector<16x128xf32>
    %cst_21 = arith.constant 0.000000e+00 : f32
    %62 = vector.broadcast %cst_21 : f32 to vector<16x128xf32>
    %63 = arith.subf %62, %0 : vector<16x128xf32>
    %64 = arith.mulf %63, %51 : vector<16x128xf32>
    %65 = arith.addf %64, %53 : vector<16x128xf32>
    %66 = arith.mulf %55, %51 : vector<16x128xf32>
    %67 = arith.subf %66, %56 : vector<16x128xf32>
    %68 = arith.mulf %65, %65 : vector<16x128xf32>
    %69 = arith.subf %67, %68 : vector<16x128xf32>
    %cst_22 = arith.constant 0.000000e+00 : f32
    %70 = vector.broadcast %cst_22 : f32 to vector<16x128xf32>
    %71 = arith.subf %70, %57 : vector<16x128xf32>
    %72 = arith.mulf %71, %65 : vector<16x128xf32>
    %cst_23 = arith.constant 0.00999999977 : f32
    %73 = vector.broadcast %cst_23 : f32 to vector<16x128xf32>
    %74 = arith.mulf %73, %65 : vector<16x128xf32>
    %75 = arith.subf %57, %74 : vector<16x128xf32>
    %c0_24 = arith.constant 0 : index
    %c0_25 = arith.constant 0 : index
    %76 = vector.load %arg3[%c0_24, %c0_25] : memref<16x128xf32, #tpu.memory_space<vmem>>, vector<16x128xf32>
    tpu.vector_store %arg3[%c0_24, %c0_25], %75 {strides = array<i32>} : memref<16x128xf32, #tpu.memory_space<vmem>>, vector<16x128xf32>,
    %cst_26 = arith.constant 9.99999974E-5 : f32
    %77 = vector.broadcast %cst_26 : f32 to vector<16x128xf32>
    %78 = arith.mulf %77, %69 : vector<16x128xf32>
    %79 = arith.addf %61, %78 : vector<16x128xf32>
    %cst_27 = arith.constant 2.000000e-02 : f32
    %80 = vector.broadcast %cst_27 : f32 to vector<16x128xf32>
    %81 = arith.mulf %80, %72 : vector<16x128xf32>
    %82 = arith.subf %79, %81 : vector<16x128xf32>
    %c0_28 = arith.constant 0 : index
    %c0_29 = arith.constant 0 : index
    %83 = vector.load %arg4[%c0_28, %c0_29] : memref<16x128xf32, #tpu.memory_space<vmem>>, vector<16x128xf32>
    tpu.vector_store %arg4[%c0_28, %c0_29], %82 {strides = array<i32>} : memref<16x128xf32, #tpu.memory_space<vmem>>, vector<16x128xf32>,
    return
  }
  func.func @transform_0(%arg0: i32) -> (i32, i32) {
    %c0_i32 = arith.constant 0 : i32
    %c0_i32_0 = arith.constant 0 : i32
    return %arg0, %c0_i32 : i32, i32
  }
  func.func @transform_1(%arg0: i32) -> (i32, i32) {
    %c0_i32 = arith.constant 0 : i32
    %c0_i32_0 = arith.constant 0 : i32
    return %arg0, %c0_i32 : i32, i32
  }
  func.func @transform_2(%arg0: i32) -> (i32, i32) {
    %c0_i32 = arith.constant 0 : i32
    %c0_i32_0 = arith.constant 0 : i32
    return %arg0, %c0_i32 : i32, i32
  }
  func.func @transform_3(%arg0: i32) -> (i32, i32) {
    %c0_i32 = arith.constant 0 : i32
    %c0_i32_0 = arith.constant 0 : i32
    return %arg0, %c0_i32 : i32, i32
  }
}

</mosaic_0001>

<bundles_post_ra>
// kernel: tpu_custom_call.1
= control target key start
LH: loop header
LB: loop body
LE: loop exit
PB: predicated region body
PF: predicated region fallthrough
CT: control target
= control target key end

     0   :  { %9 = vsyncpa [#allocation3], 0  ;;  %s529_s0 = inlined_call_operand.hbm [shape: f32[16,128], index: 0, kind: input, shape index: {}]   ;;  %s530_s1 = inlined_call_operand.hbm [shape: f32[16,128], index: 1, kind: input, shape index: {}]   ;;  %s531_s2 = inlined_call_operand.hbm [shape: f32[16,128], index: 2, kind: output, shape index: {0}]   ;;  %s532_s3 = inlined_call_operand.hbm [shape: f32[16,128], index: 3, kind: output, shape index: {1}]  }
   0x1   :  { %10 = vsyncpa [#allocation6], 0 }
   0x2   :  { %11 = vsyncpa [#allocation4], 0 }
   0x3   :  { %12 = vsyncpa [#allocation9], 0  ;;  %s17_s14 = sshll.u32 %s529_s0, 4  ;;  %s418_s15 = smov [#allocation2]   ;;  %s18_s14 = int_to_ptr.hbm [resolvable:$true] %s17_s14 }
   0x4   :  { %s19_s16 = sshll.u32 %s418_s15, 4  ;;  %s30_s19 = sshll.u32 %s530_s1, 4  ;;  %s20_s16 = int_to_ptr.vmem [resolvable:$true] %s19_s16  ;;  %s31_s19 = int_to_ptr.hbm [resolvable:$true] %s30_s19 }
   0x5   :  { %s419_s20 = smov 128   ;;  %s420_s21 = smov 8  }
   0x6   :  { %25 = dma.hbm_to_vmem [thread:$0]  %s18_s14, 256, %s20_s16, [#allocation3], %s419_s20, %s419_s20, %s420_s21  }
   0x7   :  { %s421_s22 = smov [#allocation5]  }
   0x8   :  { %s32_s23 = sshll.u32 %s421_s22, 4  ;;  %s33_s23 = int_to_ptr.vmem [resolvable:$true] %s32_s23 }
   0x9   :  { %38 = dma.hbm_to_vmem [thread:$0]  %s31_s19, 256, %s33_s23, [#allocation6], %s419_s20, %s419_s20, %s420_s21  }
   0xa   :  { %410 = dma.done.wait [#allocation3], 256  }
   0xb   :  { %411 = vsyncadd [#allocation3], 4294967040 }
   0xc   :  { %412 = dma.done.wait [#allocation6], 256  }
   0xd   :  { %413 = vsyncadd [#allocation6], 4294967040  ;;  %v457_v0 = vld [vmem:[#allocation5] sm:$0xff]  ;;  %v459_v1 = vld [vmem:[#allocation5 + $0x8] sm:$0xff]  ;;  %s423_s0 = smov [#allocation7]   ;;  %s255_s26 = sshll.u32 %s531_s2, 4  ;;  %s256_s26 = int_to_ptr.hbm [resolvable:$true] %s255_s26 }
   0xe   :  { %294 = vrsqrt.f32 %v457_v0  ;;  %vm58_vm0 = vcmp.eq.f32.partialorder %v457_v0, inf  ;;  %v61_v13 = vand.u32 2147483648, %v457_v0  ;;  %vm60_vm1 = vcmp.eq.f32.partialorder %v457_v0, 0.0  ;;  %v489_v36 = vld [vmem:[#allocation2] sm:$0xff]  ;;  %v491_v41 = vld [vmem:[#allocation2 + $0x8] sm:$0xff]  ;;  %s253_s1 = sshll.u32 %s423_s0, 4  ;;  %s254_s1 = int_to_ptr.vmem [resolvable:$true] %s253_s1 }
   0xf   :  { %296 = vrsqrt.f32 %v459_v1  ;;  %vm70_vm2 = vcmp.eq.f32.partialorder %v459_v1, inf  ;;  %v73_v17 = vand.u32 2147483648, %v459_v1  ;;  %vm72_vm3 = vcmp.eq.f32.partialorder %v459_v1, 0.0  ;;  %s424_s27 = smov [#allocation8]   ;;  %s268_s2 = sshll.u32 %s532_s3, 4  ;;  %s269_s2 = int_to_ptr.hbm [resolvable:$true] %s268_s2 }
  0x10   :  { %s266_s28 = sshll.u32 %s424_s27, 4  ;;  %s267_s28 = int_to_ptr.vmem [resolvable:$true] %s266_s28 }
  0x14   :  { %v295_v2 = vpop.eup %294 }
  0x15   :  { %v297_v3 = vpop.eup %296  ;;  %v52_v4 = vmul.f32 %v295_v2, %v457_v0 }
  0x16   :  { %v64_v5 = vmul.f32 %v297_v3, %v459_v1 }
  0x17   :  { %v53_v6 = vmul.f32 %v295_v2, %v52_v4 }
  0x18   :  { %v65_v7 = vmul.f32 %v297_v3, %v64_v5 }
  0x19   :  { %v54_v8 = vmul.f32 0.5, %v53_v6 }
  0x1a   :  { %v66_v9 = vmul.f32 0.5, %v65_v7 }
  0x1b   :  { %v55_v10 = vsub.f32 1.5, %v54_v8 }
  0x1c   :  { %v67_v11 = vsub.f32 1.5, %v66_v9 }
  0x1d   :  { %v56_v12 = vmul.f32 %v295_v2, %v55_v10 }
  0x1e   :  { %v68_v14 = vmul.f32 %v297_v3, %v67_v11 }
  0x1f   :  { %v57_v15 = vmul.f32 %v56_v12, %v457_v0 }
  0x20   :  { %v69_v16 = vmul.f32 %v68_v14, %v459_v1 }
  0x21   :  { %v59_v18 = vsel %vm58_vm0, %v457_v0, %v57_v15 }
  0x22   :  { %v474_v19 = vsel %vm60_vm1, %v61_v13, %v59_v18  ;;  %v71_v20 = vsel %vm70_vm2, %v459_v1, %v69_v16 }
  0x23   :  { %298 = vrcp.f32 %v474_v19  ;;  %v478_v21 = vsel %vm72_vm3, %v73_v17, %v71_v20  ;;  %vm80_vm4 = vweird.f32 %v474_v19  ;;  %v86_v25 = vand.u32 2147483648, %v474_v19 }
  0x24   :  { %300 = vrcp.f32 %v478_v21  ;;  %v84_v27 = vand.u32 2147483647, %v474_v19  ;;  %vm95_vm6 = vweird.f32 %v478_v21  ;;  %v101_v29 = vand.u32 2147483648, %v478_v21 }
  0x25   :  { %v99_v32 = vand.u32 2147483647, %v478_v21  ;;  %v87_v33 = vor.u32 1.1754944e-38, %v86_v25 }
  0x26   :  { %vm85_vm9 = vcmp.eq.f32.partialorder %v84_v27, 8.507059e+37  ;;  %v102_v37 = vor.u32 1.1754944e-38, %v101_v29 }
  0x27   :  { %vm100_vm11 = vcmp.eq.f32.partialorder %v99_v32, 8.507059e+37 }
  0x29   :  { %v299_v22 = vpop.eup %298 }
  0x2a   :  { %v76_v23 = vmul.f32 %v299_v22, %v474_v19  ;;  %v301_v24 = vpop.eup %300  ;;  %vm81_vm5 = vweird.f32 %v299_v22 }
  0x2b   :  { %v91_v28 = vmul.f32 %v301_v24, %v478_v21  ;;  %vm96_vm7 = vweird.f32 %v301_v24  ;;  %vm82_vm8 = vmor %vm80_vm4, %vm81_vm5 }
  0x2c   :  { %v77_v26 = vsub.f32 1.0, %v76_v23  ;;  %vm97_vm10 = vmor %vm95_vm6, %vm96_vm7 }
  0x2d   :  { %v92_v31 = vsub.f32 1.0, %v91_v28 }
  0x2e   :  { %v78_v30 = vmul.f32 %v299_v22, %v77_v26 }
  0x2f   :  { %v93_v35 = vmul.f32 %v301_v24, %v92_v31 }
  0x30   :  { %v79_v34 = vadd.f32 %v299_v22, %v78_v30 }
  0x31   :  { %v94_v39 = vadd.f32 %v301_v24, %v93_v35 }
  0x32   :  { %v83_v38 = vsel %vm82_vm8, %v299_v22, %v79_v34 }
  0x33   :  { %v88_v40 = vsel %vm85_vm9, %v87_v33, %v83_v38  ;;  %v98_v43 = vsel %vm97_vm10, %v301_v24, %v94_v39 }
  0x34   :  { %v89_v42 = vmul.f32 %v88_v40, %v489_v36  ;;  %v103_v44 = vsel %vm100_vm11, %v102_v37, %v98_v43 }
  0x35   :  { %v104_v46 = vmul.f32 %v103_v44, %v491_v41 }
  0x36   :  { %v494_v45 = vmul.f32 0.70710677, %v89_v42  ;;  %v105_v10 = vmul.f32 -0.5, %v89_v42 }
  0x37   :  { %v498_v48 = vmul.f32 0.70710677, %v104_v46  ;;  %v106_v16 = vmul.f32 -0.5, %v104_v46 }
  0x38   :  { %v121_v47 = vand.u32 2147483647, %v494_v45  ;;  %v107_v20 = vmul.f32 %v105_v10, %v89_v42  ;;  %vm117_vm4 = vcmp.ge.f32.partialorder %v494_v45, 0.0 }
  0x39   :  { %v122_v50 = vand.u32 2147483647, %v498_v48  ;;  %v108_v27 = vmul.f32 %v106_v16, %v104_v46  ;;  %vm118_vm5 = vcmp.ge.f32.partialorder %v498_v48, 0.0 }
  0x3a   :  { %v123_v49 = vmul.f32 0.3275911, %v121_v47  ;;  %v175_v5 = vsub.f32 0.0, %v121_v47  ;;  %v109_v29 = vmul.f32 1.442695, %v107_v20 }
  0x3b   :  { %v124_v52 = vmul.f32 0.3275911, %v122_v50  ;;  %v176_v14 = vsub.f32 0.0, %v122_v50  ;;  %v111_v34 = vmul.f32 1.442695, %v108_v27 }
  0x3c   :  { %v125_v51 = vadd.f32 1.0, %v123_v49  ;;  %v177_v13 = vmul.f32 %v175_v5, %v121_v47 }
  0x3d   :  { %v126_v53 = vadd.f32 1.0, %v124_v52  ;;  %v178_v25 = vmul.f32 %v176_v14, %v122_v50  ;;  %v216_v14 = vsub.f32 0.0, %v491_v41 }
  0x3e   :  { %302 = vrcp.f32 %v125_v51  ;;  %v136_v56 = vand.u32 2147483647, %v125_v51  ;;  %v138_v57 = vand.u32 2147483648, %v125_v51  ;;  %vm132_vm12 = vweird.f32 %v125_v51 }
  0x3f   :  { %304 = vrcp.f32 %v126_v53  ;;  %vm147_vm0 = vweird.f32 %v126_v53  ;;  %v153_v63 = vand.u32 2147483648, %v126_v53  ;;  %v151_v4 = vand.u32 2147483647, %v126_v53 }
  0x40   :  { %vm137_vm15 = vcmp.eq.f32.partialorder %v136_v56, 8.507059e+37  ;;  %v139_v62 = vor.u32 1.1754944e-38, %v138_v57  ;;  %v179_v24 = vmul.f32 1.442695, %v177_v13  ;;  %v181_v32 = vmul.f32 1.442695, %v178_v25 }
  0x41   :  { %v154_v9 = vor.u32 1.1754944e-38, %v153_v63  ;;  %vm152_vm3 = vcmp.eq.f32.partialorder %v151_v4, 8.507059e+37 }
  0x42   :  { %306 = vpow2.f32 %v179_v24 }
  0x43   :  { %308 = vpow2.f32 %v109_v29 }
  0x44   :  { %v303_v54 = vpop.eup %302  ;;  %310 = vpow2.f32 %v181_v32 }
  0x45   :  { %v128_v55 = vmul.f32 %v303_v54, %v125_v51  ;;  %vm133_vm13 = vweird.f32 %v303_v54  ;;  %v305_v59 = vpop.eup %304  ;;  %312 = vpow2.f32 %v111_v34  ;;  %v422_v51 = vmov -1.0  }
  0x46   :  { %v143_v61 = vmul.f32 %v305_v59, %v126_v53  ;;  %vm134_vm14 = vmor %vm132_vm12, %vm133_vm13  ;;  %vm148_vm1 = vweird.f32 %v305_v59  ;;  %v119_v52 = vsel %vm117_vm4, 1.0, %v422_v51 }
  0x47   :  { %v129_v58 = vsub.f32 1.0, %v128_v55  ;;  %vm149_vm2 = vmor %vm147_vm0, %vm148_vm1 }
  0x48   :  { %v144_v3 = vsub.f32 1.0, %v143_v61  ;;  %v307_v42 = vpop.eup %306 }
  0x49   :  { %v130_v60 = vmul.f32 %v303_v54, %v129_v58  ;;  %v309_v46 = vpop.eup %308 }
  0x4a   :  { %v145_v7 = vmul.f32 %v305_v59, %v144_v3  ;;  %v311_v50 = vpop.eup %310  ;;  %v113_v56 = vmul.f32 0.3989423, %v309_v46  ;;  %v215_v3 = vsub.f32 0.0, %v489_v36 }
  0x4b   :  { %v131_v2 = vadd.f32 %v303_v54, %v130_v60  ;;  %v313_v53 = vpop.eup %312  ;;  %v120_v60 = vsel %vm118_vm5, 1.0, %v422_v51 }
  0x4c   :  { %v146_v12 = vadd.f32 %v305_v59, %v145_v7  ;;  %v114_v45 = vmul.f32 0.3989423, %v313_v53  ;;  %v197_v63 = vmul.f32 %v113_v56, %v474_v19 }
  0x4d   :  { %v135_v6 = vsel %vm134_vm14, %v303_v54, %v131_v2 }
  0x4e   :  { %v140_v8 = vsel %vm137_vm15, %v139_v62, %v135_v6  ;;  %v150_v17 = vsel %vm149_vm2, %v305_v59, %v146_v12  ;;  %v199_v59 = vmul.f32 %v489_v36, %v489_v36  ;;  %v198_v48 = vmul.f32 %v114_v45, %v478_v21 }
  0x4f   :  { %v157_v11 = vmul.f32 1.0614054, %v140_v8  ;;  %v155_v18 = vsel %vm152_vm3, %v154_v9, %v150_v17  ;;  %v200_v6 = vmul.f32 %v491_v41, %v491_v41 }
  0x50   :  { %v158_v23 = vmul.f32 1.0614054, %v155_v18  ;;  %v201_v5 = vadd.f32 %v199_v59, %v457_v0  ;;  %v204_v21 = vmul.f32 %v198_v48, %v491_v41 }
  0x51   :  { %v159_v15 = vadd.f32 -1.4531521, %v157_v11  ;;  %v203_v11 = vmul.f32 %v197_v63, %v489_v36  ;;  %v202_v0 = vadd.f32 %v200_v6, %v459_v1 }
  0x52   :  { %v160_v28 = vadd.f32 -1.4531521, %v158_v23 }
  0x53   :  { %v161_v22 = vmul.f32 %v159_v15, %v140_v8 }
  0x54   :  { %v162_v31 = vmul.f32 %v160_v28, %v155_v18 }
  0x55   :  { %v163_v26 = vadd.f32 1.4214138, %v161_v22 }
  0x56   :  { %v164_v35 = vadd.f32 1.4214138, %v162_v31 }
  0x57   :  { %v165_v30 = vmul.f32 %v163_v26, %v140_v8 }
  0x58   :  { %v166_v38 = vmul.f32 %v164_v35, %v155_v18 }
  0x59   :  { %v167_v33 = vadd.f32 -0.28449672, %v165_v30 }
  0x5a   :  { %v168_v40 = vadd.f32 -0.28449672, %v166_v38 }
  0x5b   :  { %v169_v37 = vmul.f32 %v167_v33, %v140_v8 }
  0x5c   :  { %v170_v44 = vmul.f32 %v168_v40, %v155_v18 }
  0x5d   :  { %v171_v39 = vadd.f32 0.2548296, %v169_v37 }
  0x5e   :  { %v172_v49 = vadd.f32 0.2548296, %v170_v44 }
  0x5f   :  { %v173_v43 = vmul.f32 %v171_v39, %v140_v8 }
  0x60   :  { %v174_v55 = vmul.f32 %v172_v49, %v155_v18 }
  0x61   :  { %v183_v47 = vmul.f32 %v307_v42, %v173_v43 }
  0x62   :  { %v184_v58 = vmul.f32 %v311_v50, %v174_v55 }
  0x63   :  { %v185_v54 = vsub.f32 1.0, %v183_v47 }
  0x64   :  { %v186_v62 = vsub.f32 1.0, %v184_v58 }
  0x65   :  { %v187_v57 = vmul.f32 %v185_v54, %v119_v52 }
  0x66   :  { %v188_v4 = vmul.f32 %v186_v62, %v120_v60 }
  0x67   :  { %v189_v61 = vadd.f32 1.0, %v187_v57 }
  0x68   :  { %v190_v9 = vadd.f32 1.0, %v188_v4 }
  0x69   :  { %v191_v2 = vmul.f32 0.5, %v189_v61 }
  0x6a   :  { %v192_v13 = vmul.f32 0.5, %v190_v9 }
  0x6b   :  { %v193_v7 = vsub.f32 1.0, %v191_v2  ;;  %v195_v8 = vmul.f32 %v191_v2, %v489_v36  ;;  %v207_v10 = vmul.f32 %v201_v5, %v191_v2 }
  0x6c   :  { %v194_v17 = vsub.f32 1.0, %v192_v13  ;;  %v196_v18 = vmul.f32 %v192_v13, %v491_v41  ;;  %v208_v25 = vmul.f32 %v202_v0, %v192_v13 }
  0x6d   :  { %v205_v12 = vadd.f32 %v197_v63, %v195_v8  ;;  %v217_v19 = vmul.f32 %v215_v3, %v193_v7  ;;  %v221_v15 = vmul.f32 %v201_v5, %v193_v7  ;;  %v209_v20 = vadd.f32 %v207_v10, %v203_v11 }
  0x6e   :  { %v206_v26 = vadd.f32 %v198_v48, %v196_v18  ;;  %v218_v27 = vmul.f32 %v216_v14, %v194_v17  ;;  %v210_v30 = vadd.f32 %v208_v25, %v204_v21  ;;  %v222_v31 = vmul.f32 %v202_v0, %v194_v17 }
  0x6f   :  { %v219_v16 = vadd.f32 %v217_v19, %v197_v63  ;;  %v211_v22 = vmul.f32 %v205_v12, %v205_v12  ;;  %v223_v23 = vsub.f32 %v221_v15, %v203_v11  ;;  %v229_v24 = vsub.f32 0.0, %v205_v12 }
  0x70   :  { %v220_v1 = vadd.f32 %v218_v27, %v198_v48  ;;  %v212_v33 = vmul.f32 %v206_v26, %v206_v26  ;;  %v230_v34 = vsub.f32 0.0, %v206_v26  ;;  %v224_v38 = vsub.f32 %v222_v31, %v204_v21 }
  0x71   :  { %v233_v36 = vmul.f32 0.01, %v219_v16  ;;  %v225_v28 = vmul.f32 %v219_v16, %v219_v16  ;;  %v231_v29 = vmul.f32 %v229_v24, %v219_v16  ;;  %v213_v35 = vsub.f32 %v209_v20, %v211_v22 }
  0x72   :  { %v234_v41 = vmul.f32 0.01, %v220_v1  ;;  %v226_v39 = vmul.f32 %v220_v1, %v220_v1  ;;  %v232_v40 = vmul.f32 %v230_v34, %v220_v1  ;;  %v214_v46 = vsub.f32 %v210_v30, %v212_v33 }
  0x73   :  { %v235_v32 = vsub.f32 %v205_v12, %v233_v36  ;;  %v227_v37 = vsub.f32 %v223_v23, %v225_v28  ;;  %v243_v43 = vmul.f32 0.02, %v231_v29 }
  0x74   :  { %v236_v44 = vsub.f32 %v206_v26, %v234_v41  ;;  %v228_v47 = vsub.f32 %v224_v38, %v226_v39  ;;  %v244_v51 = vmul.f32 0.02, %v232_v40 }
  0x75   :  { %237 = vst [vmem:[#allocation7] sm:$0xff] %v235_v32  ;;  %v239_v42 = vmul.f32 0.0001, %v227_v37 }
  0x76   :  { %238 = vst [vmem:[#allocation7 + $0x8] sm:$0xff] %v236_v44  ;;  %v240_v50 = vmul.f32 0.0001, %v228_v47 }
  0x77   :  { %v241_v49 = vadd.f32 %v239_v42, %v213_v35  ;;  %261 = dma.vmem_to_hbm [thread:$0]  %s254_s1, 256, %s256_s26, [#allocation4], %s419_s20, %s419_s20, %s420_s21  }
  0x78   :  { %v242_v53 = vadd.f32 %v240_v50, %v214_v46 }
  0x79   :  { %v245_v52 = vsub.f32 %v241_v49, %v243_v43 }
  0x7a   :  { %v246_v54 = vsub.f32 %v242_v53, %v244_v51 }
  0x7b   :  { %247 = vst [vmem:[#allocation8] sm:$0xff] %v245_v52 }
  0x7c   :  { %248 = vst [vmem:[#allocation8 + $0x8] sm:$0xff] %v246_v54 }
  0x7d   :  { %274 = dma.vmem_to_hbm [thread:$0]  %s267_s28, 256, %s269_s2, [#allocation9], %s419_s20, %s419_s20, %s420_s21  }
  0x7e   :  { %414 = dma.done.wait [#allocation4], 256  }
  0x7f   :  { %415 = vsyncadd [#allocation4], 4294967040 }
  0x80   :  { %416 = dma.done.wait [#allocation9], 256  }
  0x81   :  { %417 = vsyncadd [#allocation9], 4294967040 }
  0x82   :  { %283 = vsyncpa [#allocation3], 1 }
  0x83   :  { %284 = vsyncpa [#allocation6], 1 }
  0x84   :  { %285 = vsyncpa [#allocation4], 1 }
  0x85   :  { %286 = vsyncpa [#allocation9], 1 }

</bundles_post_ra>
